<compile_context>
chip_gen: v7x
topology: tpu7x:2x2x1
jax: 0.10.0
libtpu: 0.0.40
codegen_flags: <defaults>
</compile_context>

<pallas_src>
from functools import partial
from typing import Sequence

import jax
import jax.numpy as jnp
from jax.experimental import pallas as pl
from jax.experimental.pallas import tpu as pltpu


# ---------------------------------------------------------------------------
# Small helpers.
# ---------------------------------------------------------------------------

def _round_up(x: int, m: int) -> int:
    return ((x + m - 1) // m) * m


def _cdiv(a: int, b: int) -> int:
    return (a + b - 1) // b


def _pick_div_tile(dim: int, prefs: Sequence[int] = (512, 256, 128)) -> int:
    """Largest preferred tile that divides `dim`, else the full dim."""
    for t in prefs:
        if dim % t == 0:
            return t
    return dim


def _vmem_capacity_bytes() -> int:
    """Physical VMEM per TensorCore, generation-aware, with a safe fallback."""
    try:
        return int(pltpu.get_tpu_info().vmem_capacity_bytes)
    except Exception:
        return 64 << 20  # conservative default (v7x per-TC VMEM)


def _supports_single_buffering() -> bool:
    """True if BlockSpec accepts pipeline_mode=pl.Buffered(1) (single-buffered
    resident inputs -> half the VMEM footprint for constant-index params)."""
    try:
        pl.BlockSpec((8, 128), lambda i: (0, 0), pipeline_mode=pl.Buffered(1))
        return True
    except Exception:
        return False


_HAS_BUFFERED_1 = _supports_single_buffering()


def _resolve_activation(activation):
    if activation is None:
        return None
    if callable(activation):
        return activation
    table = {
        "relu": lambda v: jnp.maximum(v, 0.0),
        "tanh": jnp.tanh,
        "sigmoid": jax.nn.sigmoid,
        "gelu": jax.nn.gelu,
    }
    if activation in table:
        return table[activation]
    raise ValueError(f"unsupported activation: {activation!r}")


# ---------------------------------------------------------------------------
# Fused path: the whole layer stack in one pallas_call (weights VMEM-resident).
# ---------------------------------------------------------------------------

def _fused_dense_kernel(*refs, n_layers: int, use_bias: bool, act_fn):
    # refs = (x_ref, w_0, [b_0], w_1, [b_1], ..., o_ref)
    x_ref, o_ref = refs[0], refs[-1]
    params = refs[1:-1]

    h = x_ref[...]
    p = 0
    for _ in range(n_layers):
        w_ref = params[p]
        p += 1
        # MXU matmul with f32 accumulation; casting the LHS to the weight dtype
        # lets the optional bf16 weight path feed the MXU natively.
        acc = jnp.dot(h.astype(w_ref.dtype), w_ref[...],
                      preferred_element_type=jnp.float32)
        if use_bias:
            acc = acc + params[p][...].astype(jnp.float32)
            p += 1
        if act_fn is not None:
            acc = act_fn(acc)
        h = acc  # stays f32 between layers; cast only at the final store
    o_ref[...] = h.astype(o_ref.dtype)


def _choose_tm(M: int, n_in: int, layer_widths: Sequence[int],
               resident_bytes: int, x_bytes: int, out_bytes: int,
               budget_bytes: int) -> int:
    """Largest power-of-two row tile whose working set fits the VMEM budget.

    Accounts for: double-buffered x / out tiles, TWO live f32 intermediates per
    layer (dot input + dot output), and the resident-parameter footprint
    (already scaled for single/double buffering by the caller)."""
    avail = max(budget_bytes - resident_bytes, 2 << 20)
    n_out = layer_widths[-1]
    widest = max([n_in, *layer_widths])
    tm = 1024
    while tm > 128:
        tile_bytes = (2 * tm * n_in * x_bytes        # double-buffered x tile
                      + 2 * tm * n_out * out_bytes   # double-buffered out tile
                      + 2 * tm * widest * 4)         # two live f32 intermediates
        if tile_bytes <= avail:
            break
        tm //= 2
    # Megacore: keep >=2 row blocks when M is big enough so both TensorCores
    # (v7x) get work under dimension_semantics=("parallel",).
    if M >= 256:
        tm = min(tm, max(128, _round_up(_cdiv(M, 2), 8)))
    # If M is smaller than the tile, use the full (legal) dimension instead.
    return min(tm, M)


def _dense_fused(x2d, weights_t, biases, *, use_bias, act_fn, out_dtype,
                 vmem_limit, single_buffer):
    M, n_in = x2d.shape

    param_bytes = sum(int(w.size) * w.dtype.itemsize for w in weights_t)
    param_bytes += sum(int(b.size) * b.dtype.itemsize for b in biases)
    resident_bytes = param_bytes * (1 if single_buffer else 2)

    tm = _choose_tm(M, n_in, [w.shape[1] for w in weights_t], resident_bytes,
                    x2d.dtype.itemsize, jnp.dtype(out_dtype).itemsize,
                    budget_bytes=vmem_limit - (4 << 20))

    def resident(shape):
        # Constant index_map -> the block never changes across the row grid.
        if single_buffer:
            return pl.BlockSpec(shape, lambda i: (0,) * len(shape),
                                pipeline_mode=pl.Buffered(1))
        return pl.BlockSpec(shape, lambda i: (0,) * len(shape))

    in_specs = [pl.BlockSpec((tm, n_in), lambda i: (i, 0))]
    inputs = [x2d]
    for layer, w in enumerate(weights_t):
        in_specs.append(resident(w.shape))
        inputs.append(w)
        if use_bias:
            b = biases[layer]
            in_specs.append(resident(b.shape))
            inputs.append(b)

    n_out_final = weights_t[-1].shape[1]  # final layer is NOT lane-padded
    kernel = partial(_fused_dense_kernel, n_layers=len(weights_t),
                     use_bias=use_bias, act_fn=act_fn)

    return pl.pallas_call(
        kernel,
        out_shape=jax.ShapeDtypeStruct((M, n_out_final), out_dtype),
        grid_spec=pltpu.PrefetchScalarGridSpec(
            num_scalar_prefetch=0,
            grid=(_cdiv(M, tm),),
            in_specs=in_specs,
            out_specs=pl.BlockSpec((tm, n_out_final), lambda i: (i, 0)),
        ),
        compiler_params=pltpu.CompilerParams(
            dimension_semantics=("parallel",),
            vmem_limit_bytes=vmem_limit,
        ),
    )(*inputs)


# ---------------------------------------------------------------------------
# Fallback path: per-layer (M, N, K)-tiled matmul with an f32 accumulator,
# for parameter stacks too large to keep VMEM-resident.
# ---------------------------------------------------------------------------

def _tiled_linear_kernel(*refs, use_bias: bool, act_fn):
    if use_bias:
        x_ref, w_ref, b_ref, o_ref, acc_ref = refs
    else:
        x_ref, w_ref, o_ref, acc_ref = refs

    k = pl.program_id(2)

    @pl.when(k == 0)
    def _init():
        acc_ref[...] = jnp.zeros_like(acc_ref)

    acc_ref[...] += jnp.dot(x_ref[...].astype(w_ref.dtype), w_ref[...],
                            preferred_element_type=jnp.float32)

    @pl.when(k == pl.num_programs(2) - 1)
    def _finalize():
        acc = acc_ref[...]
        if use_bias:
            acc = acc + b_ref[...].astype(jnp.float32)
        if act_fn is not None:
            acc = act_fn(acc)
        o_ref[...] = acc.astype(o_ref.dtype)


def _linear_tiled(x2d, w_t, b, *, use_bias, act_fn, out_dtype, vmem_limit):
    M, n_in = x2d.shape
    assert w_t.shape[0] == n_in
    n_out = w_t.shape[1]

    xb = x2d.dtype.itemsize
    wb = w_t.dtype.itemsize
    ob = jnp.dtype(out_dtype).itemsize

    tn = _pick_div_tile(n_out)
    tk = _pick_div_tile(n_in)

    # Bigger row tiles halve weight re-streaming on 128 MiB-VMEM parts.
    tm = 1024 if vmem_limit >= (64 << 20) else 512
    budget = vmem_limit - (4 << 20)
    while tm > 128:
        working = (2 * tm * tk * xb + 2 * tk * tn * wb
                   + 2 * tm * tn * ob + tm * tn * 4)
        if working <= budget:
            break
        tm //= 2
    tm = min(tm, M)

    in_specs = [
        pl.BlockSpec((tm, tk), lambda i, j, k: (i, k)),
        pl.BlockSpec((tk, tn), lambda i, j, k: (k, j)),
    ]
    inputs = [x2d, w_t]
    if use_bias:
        in_specs.append(pl.BlockSpec((1, tn), lambda i, j, k: (0, j)))
        inputs.append(b)

    kernel = partial(_tiled_linear_kernel, use_bias=use_bias, act_fn=act_fn)

    return pl.pallas_call(
        kernel,
        out_shape=jax.ShapeDtypeStruct((M, n_out), out_dtype),
        grid_spec=pltpu.PrefetchScalarGridSpec(
            num_scalar_prefetch=0,
            grid=(_cdiv(M, tm), n_out // tn, n_in // tk),
            in_specs=in_specs,
            out_specs=pl.BlockSpec((tm, tn), lambda i, j, k: (i, j)),
            scratch_shapes=[pltpu.VMEM((tm, tn), jnp.float32)],
        ),
        compiler_params=pltpu.CompilerParams(
            dimension_semantics=("parallel", "parallel", "arbitrary"),
            vmem_limit_bytes=vmem_limit,
        ),
    )(*inputs)


# ---------------------------------------------------------------------------
# Module wrapper.
# ---------------------------------------------------------------------------

class DensePallas:
    """JAX/Pallas counterpart of luz.modules.Dense (forward pass only).

    NOTE on padding: intermediate layer widths are zero-padded to multiples of
    128 lanes.  Zero weight rows in the next layer make this inert for any
    ELEMENTWISE activation (relu/tanh/sigmoid/gelu/...).  Feature-reducing
    activations (softmax, layernorm) would observe the padded columns and are
    not supported by the fused/padded path.
    """

    def __init__(self, *features: int, bias: bool = True, activation=None,
                 key=None, dtype=jnp.float32, compute_dtype=None,
                 max_fused_param_bytes=None):
        assert len(features) >= 2, "need at least one (n_in, n_out) pair"
        self.features = tuple(int(f) for f in features)
        self.use_bias = bool(bias)
        self.act_fn = _resolve_activation(activation)
        self.dtype = jnp.dtype(dtype)
        self.compute_dtype = (jnp.dtype(compute_dtype)
                              if compute_dtype is not None else self.dtype)

        # Generation-aware VMEM budget (v5e/v6e: 128 MiB, v7x: 64 MiB).
        vmem_cap = _vmem_capacity_bytes()
        self.vmem_limit = min(int(vmem_cap * 3 // 4), 100 << 20)
        if max_fused_param_bytes is None:
            # Leave room for x/out tiles + intermediates beside the params.
            max_fused_param_bytes = max(self.vmem_limit - (12 << 20), 4 << 20)
        self.max_fused_param_bytes = max_fused_param_bytes

        if key is None:
            key = jax.random.PRNGKey(0)
        w_dtype = self.compute_dtype

        # Raw (PyTorch-layout) parameters, kept for reference checking.
        self.weights_raw, self.biases_raw = [], []
        # Kernel-layout parameters: transposed once to (n_in, n_out);
        # intermediate n_out zero-padded to multiples of 128 (lane-dense);
        # the FINAL layer keeps its true n_out (true-width output store).
        self.weights_t, self.biases_pad = [], []

        n_layers = len(self.features) - 1
        prev_cols = self.features[0]  # (padded) input width of the next layer
        for layer, (n_in, n_out) in enumerate(zip(self.features,
                                                  self.features[1:])):
            key, wk, bk = jax.random.split(key, 3)
            bound = 1.0 / float(n_in) ** 0.5  # torch.nn.Linear default init
            w = jax.random.uniform(wk, (n_out, n_in), self.dtype, -bound, bound)
            self.weights_raw.append(w)

            last = layer == n_layers - 1
            n_out_store = n_out if last else _round_up(n_out, 128)
            w_t = jnp.zeros((prev_cols, n_out_store), w_dtype)
            w_t = w_t.at[:n_in, :n_out].set(w.T.astype(w_dtype))
            self.weights_t.append(w_t)

            if self.use_bias:
                bvec = jax.random.uniform(bk, (n_out,), self.dtype, -bound, bound)
                self.biases_raw.append(bvec)
                b_pad = jnp.zeros((1, n_out_store), self.dtype)
                b_pad = b_pad.at[0, :n_out].set(bvec)
                self.biases_pad.append(b_pad)

            prev_cols = n_out_store

    # -- forward ------------------------------------------------------------

    def _tiled_forward(self, x2d):
        # TODO(synk): replace this per-layer fallback with a weight-streaming
        # fused kernel (pltpu.emit_pipeline over HBM-resident weights) so
        # activations never round-trip HBM between layers.
        h = x2d
        n_layers = len(self.weights_t)
        for layer, w_t in enumerate(self.weights_t):
            b = self.biases_pad[layer] if self.use_bias else None
            last = layer == n_layers - 1
            # Intermediate activations stay in compute dtype (bf16 fast path
            # halves HBM traffic); only the final layer stores the user dtype.
            h = _linear_tiled(h, w_t, b, use_bias=self.use_bias,
                              act_fn=self.act_fn,
                              out_dtype=self.dtype if last else self.compute_dtype,
                              vmem_limit=self.vmem_limit)
        return h

    def __call__(self, x: jax.Array) -> jax.Array:
        orig_shape = x.shape
        assert orig_shape[-1] == self.features[0], "last dim must equal features[0]"
        # Cast once in the wrapper (bf16 fast path) instead of per grid step.
        x2d = x.reshape(-1, self.features[0]).astype(self.compute_dtype)
        n_out_final = self.features[-1]

        param_bytes = sum(int(w.size) * w.dtype.itemsize for w in self.weights_t)
        param_bytes += sum(int(b.size) * b.dtype.itemsize for b in self.biases_pad)

        out2d = None
        if param_bytes <= self.max_fused_param_bytes:
            # Try single-buffered resident params first; fall back to
            # double-buffered, then to the tiled path if compilation fails
            # (e.g. VMEM overflow on a small-VMEM generation).
            attempts = (True, False) if _HAS_BUFFERED_1 else (False,)
            for single in attempts:
                try:
                    out2d = _dense_fused(
                        x2d, self.weights_t, self.biases_pad,
                        use_bias=self.use_bias, act_fn=self.act_fn,
                        out_dtype=self.dtype, vmem_limit=self.vmem_limit,
                        single_buffer=single)
                    break
                except Exception:
                    out2d = None

        if out2d is None:
            out2d = self._tiled_forward(x2d)

        return out2d.reshape(*orig_shape[:-1], n_out_final)


# ---------------------------------------------------------------------------
# Reference & self-test.
# ---------------------------------------------------------------------------

def _reference(x, weights_raw, biases_raw, use_bias, act_fn):
    y = x.reshape(-1, x.shape[-1]).astype(jnp.float32)
    for layer, w in enumerate(weights_raw):
        y = y @ w.T.astype(jnp.float32)
        if use_bias:
            y = y + biases_raw[layer].astype(jnp.float32)
        if act_fn is not None:
            y = act_fn(y)
    return y.reshape(*x.shape[:-1], weights_raw[-1].shape[0])


if __name__ == "__main__":
    key = jax.random.PRNGKey(0)
    k_x, k_x2, k_p, k_p2 = jax.random.split(key, 4)

    # Dense(32, 64, 16, bias=True, activation=relu); input (N, *, H_in) = (2, 8, 32)
    features = (32, 64, 16)
    x = jax.random.normal(k_x, (2, 8, features[0]), jnp.float32)

    model = DensePallas(*features, bias=True, activation="relu", key=k_p)
    y = jax.block_until_ready(model(x))
    y_ref = _reference(x, model.weights_raw, model.biases_raw, True, model.act_fn)
    assert y.shape == (2, 8, features[-1])
    assert jnp.allclose(y, y_ref, atol=1e-5, rtol=1e-5)

    # Exercise the large-parameter fallback (per-layer M/N/K-tiled matmul).
    saved = model.max_fused_param_bytes
    model.max_fused_param_bytes = 0
    y_tiled = jax.block_until_ready(model(x))
    assert jnp.allclose(y_tiled, y_ref, atol=1e-5, rtol=1e-5)
    model.max_fused_param_bytes = saved

    # No-bias / no-activation variant with a ragged row count (M = 15).
    model_nb = DensePallas(16, 32, bias=False, activation=None, key=k_p2)
    x_nb = jax.random.normal(k_x2, (3, 5, 16), jnp.float32)
    y_nb = jax.block_until_ready(model_nb(x_nb))
    y_nb_ref = _reference(x_nb, model_nb.weights_raw, model_nb.biases_raw, False, None)
    assert y_nb.shape == (3, 5, 32)
    assert jnp.allclose(y_nb, y_nb_ref, atol=1e-5, rtol=1e-5)

    # bf16 MXU feed with f32 accumulation (looser tolerance).
    model_bf = DensePallas(*features, bias=True, activation="relu", key=k_p,
                           compute_dtype=jnp.bfloat16)
    y_bf = jax.block_until_ready(model_bf(x))
    y_bf_ref = _reference(x, model_bf.weights_raw, model_bf.biases_raw, True,
                          model_bf.act_fn)
    assert y_bf.dtype == jnp.float32
    assert jnp.allclose(y_bf, y_bf_ref, atol=5e-2, rtol=5e-2)

    print("KERNEL_OK")
</pallas_src>

<mosaic_0001>
module attributes {stable_mosaic.version = 11 : i64} {
  func.func @_fused_dense_kernel(%arg0: i32, %arg1: memref<16x32xf32, #tpu.memory_space<vmem>>, %arg2: memref<32x128xf32, #tpu.memory_space<vmem>>, %arg3: memref<1x128xf32, #tpu.memory_space<vmem>>, %arg4: memref<128x16xf32, #tpu.memory_space<vmem>>, %arg5: memref<1x16xf32, #tpu.memory_space<vmem>>, %arg6: memref<16x16xf32, #tpu.memory_space<vmem>>) attributes {dimension_semantics = [#tpu.dimension_semantics<parallel>], iteration_bounds = array<i64: 1>, scalar_prefetch = 0 : i64, scratch_operands = 0 : i64, tpu.core_type = #tpu.core_type<tc>, window_params = [{transform_indices = @transform_0, window_bounds = array<i64: 16, 32>}, {pipeline_mode = #tpu.pipeline_mode<synchronous>, transform_indices = @transform_1, window_bounds = array<i64: 32, 128>}, {pipeline_mode = #tpu.pipeline_mode<synchronous>, transform_indices = @transform_2, window_bounds = array<i64: 1, 128>}, {pipeline_mode = #tpu.pipeline_mode<synchronous>, transform_indices = @transform_3, window_bounds = array<i64: 128, 16>}, {pipeline_mode = #tpu.pipeline_mode<synchronous>, transform_indices = @transform_4, window_bounds = array<i64: 1, 16>}, {transform_indices = @transform_5, window_bounds = array<i64: 16, 16>}]} {
    %c0 = arith.constant 0 : index
    %c0_0 = arith.constant 0 : index
    %0 = vector.load %arg1[%c0, %c0_0] : memref<16x32xf32, #tpu.memory_space<vmem>>, vector<16x32xf32>
    %c0_1 = arith.constant 0 : index
    %c0_2 = arith.constant 0 : index
    %1 = vector.load %arg2[%c0_1, %c0_2] : memref<32x128xf32, #tpu.memory_space<vmem>>, vector<32x128xf32>
    %cst = arith.constant dense<0.000000e+00> : vector<16x128xf32>
    %2 = tpu.matmul %0, %1, %cst {dimension_numbers = #tpu.dot_dimension_numbers<[1], [0], [0], [1], [0, 0, 1, 1], [], []>} : vector<16x32xf32>, vector<32x128xf32>, vector<16x128xf32> -> vector<16x128xf32>
    %c0_3 = arith.constant 0 : index
    %c0_4 = arith.constant 0 : index
    %3 = vector.load %arg3[%c0_3, %c0_4] : memref<1x128xf32, #tpu.memory_space<vmem>>, vector<1x128xf32>
    %4 = vector.broadcast %3 : vector<1x128xf32> to vector<16x128xf32>
    %5 = arith.addf %2, %4 : vector<16x128xf32>
    %cst_5 = arith.constant 0.000000e+00 : f32
    %6 = vector.broadcast %cst_5 : f32 to vector<16x128xf32>
    %7 = arith.maximumf %5, %6 : vector<16x128xf32>
    %c0_6 = arith.constant 0 : index
    %c0_7 = arith.constant 0 : index
    %8 = vector.load %arg4[%c0_6, %c0_7] : memref<128x16xf32, #tpu.memory_space<vmem>>, vector<128x16xf32>
    %cst_8 = arith.constant dense<0.000000e+00> : vector<16x16xf32>
    %9 = tpu.matmul %7, %8, %cst_8 {dimension_numbers = #tpu.dot_dimension_numbers<[1], [0], [0], [1], [0, 0, 1, 1], [], []>} : vector<16x128xf32>, vector<128x16xf32>, vector<16x16xf32> -> vector<16x16xf32>
    %c0_9 = arith.constant 0 : index
    %c0_10 = arith.constant 0 : index
    %10 = vector.load %arg5[%c0_9, %c0_10] : memref<1x16xf32, #tpu.memory_space<vmem>>, vector<1x16xf32>
    %11 = vector.broadcast %10 : vector<1x16xf32> to vector<16x16xf32>
    %12 = arith.addf %9, %11 : vector<16x16xf32>
    %cst_11 = arith.constant 0.000000e+00 : f32
    %13 = vector.broadcast %cst_11 : f32 to vector<16x16xf32>
    %14 = arith.maximumf %12, %13 : vector<16x16xf32>
    %c0_12 = arith.constant 0 : index
    %c0_13 = arith.constant 0 : index
    %15 = vector.load %arg6[%c0_12, %c0_13] : memref<16x16xf32, #tpu.memory_space<vmem>>, vector<16x16xf32>
    tpu.vector_store %arg6[%c0_12, %c0_13], %14 {strides = array<i32>} : memref<16x16xf32, #tpu.memory_space<vmem>>, vector<16x16xf32>,
    return
  }
  func.func @transform_0(%arg0: i32) -> (i32, i32) {
    %c0_i32 = arith.constant 0 : i32
    %c0_i32_0 = arith.constant 0 : i32
    return %arg0, %c0_i32 : i32, i32
  }
  func.func @transform_1(%arg0: i32) -> (i32, i32) {
    %c0_i32 = arith.constant 0 : i32
    %c0_i32_0 = arith.constant 0 : i32
    %c0_i32_1 = arith.constant 0 : i32
    return %c0_i32, %c0_i32_0 : i32, i32
  }
  func.func @transform_2(%arg0: i32) -> (i32, i32) {
    %c0_i32 = arith.constant 0 : i32
    %c0_i32_0 = arith.constant 0 : i32
    %c0_i32_1 = arith.constant 0 : i32
    return %c0_i32, %c0_i32_0 : i32, i32
  }
  func.func @transform_3(%arg0: i32) -> (i32, i32) {
    %c0_i32 = arith.constant 0 : i32
    %c0_i32_0 = arith.constant 0 : i32
    %c0_i32_1 = arith.constant 0 : i32
    return %c0_i32, %c0_i32_0 : i32, i32
  }
  func.func @transform_4(%arg0: i32) -> (i32, i32) {
    %c0_i32 = arith.constant 0 : i32
    %c0_i32_0 = arith.constant 0 : i32
    %c0_i32_1 = arith.constant 0 : i32
    return %c0_i32, %c0_i32_0 : i32, i32
  }
  func.func @transform_5(%arg0: i32) -> (i32, i32) {
    %c0_i32 = arith.constant 0 : i32
    %c0_i32_0 = arith.constant 0 : i32
    return %arg0, %c0_i32 : i32, i32
  }
}

module attributes {stable_mosaic.version = 11 : i64} {
  func.func @_fused_dense_kernel(%arg0: i32, %arg1: memref<16x32xf32, #tpu.memory_space<vmem>>, %arg2: memref<32x128xf32, #tpu.memory_space<vmem>>, %arg3: memref<1x128xf32, #tpu.memory_space<vmem>>, %arg4: memref<128x16xf32, #tpu.memory_space<vmem>>, %arg5: memref<1x16xf32, #tpu.memory_space<vmem>>, %arg6: memref<16x16xf32, #tpu.memory_space<vmem>>) attributes {dimension_semantics = [#tpu.dimension_semantics<parallel>], iteration_bounds = array<i64: 1>, scalar_prefetch = 0 : i64, scratch_operands = 0 : i64, tpu.core_type = #tpu.core_type<tc>, window_params = [{transform_indices = @transform_0, window_bounds = array<i64: 16, 32>}, {pipeline_mode = #tpu.pipeline_mode<synchronous>, transform_indices = @transform_1, window_bounds = array<i64: 32, 128>}, {pipeline_mode = #tpu.pipeline_mode<synchronous>, transform_indices = @transform_2, window_bounds = array<i64: 1, 128>}, {pipeline_mode = #tpu.pipeline_mode<synchronous>, transform_indices = @transform_3, window_bounds = array<i64: 128, 16>}, {pipeline_mode = #tpu.pipeline_mode<synchronous>, transform_indices = @transform_4, window_bounds = array<i64: 1, 16>}, {transform_indices = @transform_5, window_bounds = array<i64: 16, 16>}]} {
    %c0 = arith.constant 0 : index
    %c0_0 = arith.constant 0 : index
    %0 = vector.load %arg1[%c0, %c0_0] : memref<16x32xf32, #tpu.memory_space<vmem>>, vector<16x32xf32>
    %c0_1 = arith.constant 0 : index
    %c0_2 = arith.constant 0 : index
    %1 = vector.load %arg2[%c0_1, %c0_2] : memref<32x128xf32, #tpu.memory_space<vmem>>, vector<32x128xf32>
    %cst = arith.constant dense<0.000000e+00> : vector<16x128xf32>
    %2 = tpu.matmul %0, %1, %cst {dimension_numbers = #tpu.dot_dimension_numbers<[1], [0], [0], [1], [0, 0, 1, 1], [], []>} : vector<16x32xf32>, vector<32x128xf32>, vector<16x128xf32> -> vector<16x128xf32>
    %c0_3 = arith.constant 0 : index
    %c0_4 = arith.constant 0 : index
    %3 = vector.load %arg3[%c0_3, %c0_4] : memref<1x128xf32, #tpu.memory_space<vmem>>, vector<1x128xf32>
    %4 = vector.broadcast %3 : vector<1x128xf32> to vector<16x128xf32>
    %5 = arith.addf %2, %4 : vector<16x128xf32>
    %cst_5 = arith.constant 0.000000e+00 : f32
    %6 = vector.broadcast %cst_5 : f32 to vector<16x128xf32>
    %7 = arith.maximumf %5, %6 : vector<16x128xf32>
    %c0_6 = arith.constant 0 : index
    %c0_7 = arith.constant 0 : index
    %8 = vector.load %arg4[%c0_6, %c0_7] : memref<128x16xf32, #tpu.memory_space<vmem>>, vector<128x16xf32>
    %cst_8 = arith.constant dense<0.000000e+00> : vector<16x16xf32>
    %9 = tpu.matmul %7, %8, %cst_8 {dimension_numbers = #tpu.dot_dimension_numbers<[1], [0], [0], [1], [0, 0, 1, 1], [], []>} : vector<16x128xf32>, vector<128x16xf32>, vector<16x16xf32> -> vector<16x16xf32>
    %c0_9 = arith.constant 0 : index
    %c0_10 = arith.constant 0 : index
    %10 = vector.load %arg5[%c0_9, %c0_10] : memref<1x16xf32, #tpu.memory_space<vmem>>, vector<1x16xf32>
    %11 = vector.broadcast %10 : vector<1x16xf32> to vector<16x16xf32>
    %12 = arith.addf %9, %11 : vector<16x16xf32>
    %cst_11 = arith.constant 0.000000e+00 : f32
    %13 = vector.broadcast %cst_11 : f32 to vector<16x16xf32>
    %14 = arith.maximumf %12, %13 : vector<16x16xf32>
    %c0_12 = arith.constant 0 : index
    %c0_13 = arith.constant 0 : index
    %15 = vector.load %arg6[%c0_12, %c0_13] : memref<16x16xf32, #tpu.memory_space<vmem>>, vector<16x16xf32>
    tpu.vector_store %arg6[%c0_12, %c0_13], %14 {strides = array<i32>} : memref<16x16xf32, #tpu.memory_space<vmem>>, vector<16x16xf32>,
    return
  }
  func.func @transform_0(%arg0: i32) -> (i32, i32) {
    %c0_i32 = arith.constant 0 : i32
    %c0_i32_0 = arith.constant 0 : i32
    return %arg0, %c0_i32 : i32, i32
  }
  func.func @transform_1(%arg0: i32) -> (i32, i32) {
    %c0_i32 = arith.constant 0 : i32
    %c0_i32_0 = arith.constant 0 : i32
    %c0_i32_1 = arith.constant 0 : i32
    return %c0_i32, %c0_i32_0 : i32, i32
  }
  func.func @transform_2(%arg0: i32) -> (i32, i32) {
    %c0_i32 = arith.constant 0 : i32
    %c0_i32_0 = arith.constant 0 : i32
    %c0_i32_1 = arith.constant 0 : i32
    return %c0_i32, %c0_i32_0 : i32, i32
  }
  func.func @transform_3(%arg0: i32) -> (i32, i32) {
    %c0_i32 = arith.constant 0 : i32
    %c0_i32_0 = arith.constant 0 : i32
    %c0_i32_1 = arith.constant 0 : i32
    return %c0_i32, %c0_i32_0 : i32, i32
  }
  func.func @transform_4(%arg0: i32) -> (i32, i32) {
    %c0_i32 = arith.constant 0 : i32
    %c0_i32_0 = arith.constant 0 : i32
    %c0_i32_1 = arith.constant 0 : i32
    return %c0_i32, %c0_i32_0 : i32, i32
  }
  func.func @transform_5(%arg0: i32) -> (i32, i32) {
    %c0_i32 = arith.constant 0 : i32
    %c0_i32_0 = arith.constant 0 : i32
    return %arg0, %c0_i32 : i32, i32
  }
}

module attributes {stable_mosaic.version = 11 : i64} {
  func.func @_tiled_linear_kernel(%arg0: i32, %arg1: i32, %arg2: i32, %arg3: memref<16x32xf32, #tpu.memory_space<vmem>>, %arg4: memref<32x128xf32, #tpu.memory_space<vmem>>, %arg5: memref<1x128xf32, #tpu.memory_space<vmem>>, %arg6: memref<16x128xf32, #tpu.memory_space<vmem>>, %arg7: memref<16x128xf32, #tpu.memory_space<vmem>>) attributes {dimension_semantics = [#tpu.dimension_semantics<parallel>, #tpu.dimension_semantics<parallel>, #tpu.dimension_semantics<arbitrary>], iteration_bounds = array<i64: 1, 1, 1>, scalar_prefetch = 0 : i64, scratch_operands = 1 : i64, tpu.core_type = #tpu.core_type<tc>, window_params = [{transform_indices = @transform_0, window_bounds = array<i64: 16, 32>}, {transform_indices = @transform_1, window_bounds = array<i64: 32, 128>}, {transform_indices = @transform_2, window_bounds = array<i64: 1, 128>}, {transform_indices = @transform_3, window_bounds = array<i64: 16, 128>}]} {
    %c0_i32 = arith.constant 0 : i32
    %0 = arith.cmpi eq, %arg2, %c0_i32 : i32
    %1 = arith.extui %0 : i1 to i32
    %c0_i32_0 = arith.constant 0 : i32
    %2 = arith.cmpi ne, %1, %c0_i32_0 : i32
    scf.if %2 {
      %cst_10 = arith.constant 0.000000e+00 : f32
      %12 = vector.broadcast %cst_10 : f32 to vector<16x128xf32>
      %c0_11 = arith.constant 0 : index
      %c0_12 = arith.constant 0 : index
      %13 = vector.load %arg7[%c0_11, %c0_12] : memref<16x128xf32, #tpu.memory_space<vmem>>, vector<16x128xf32>
      tpu.vector_store %arg7[%c0_11, %c0_12], %12 {strides = array<i32>} : memref<16x128xf32, #tpu.memory_space<vmem>>, vector<16x128xf32>,
    } else {
    }
    %c0 = arith.constant 0 : index
    %c0_1 = arith.constant 0 : index
    %3 = vector.load %arg7[%c0, %c0_1] : memref<16x128xf32, #tpu.memory_space<vmem>>, vector<16x128xf32>
    %c0_2 = arith.constant 0 : index
    %c0_3 = arith.constant 0 : index
    %4 = vector.load %arg3[%c0_2, %c0_3] : memref<16x32xf32, #tpu.memory_space<vmem>>, vector<16x32xf32>
    %c0_4 = arith.constant 0 : index
    %c0_5 = arith.constant 0 : index
    %5 = vector.load %arg4[%c0_4, %c0_5] : memref<32x128xf32, #tpu.memory_space<vmem>>, vector<32x128xf32>
    %cst = arith.constant dense<0.000000e+00> : vector<16x128xf32>
    %6 = tpu.matmul %4, %5, %cst {dimension_numbers = #tpu.dot_dimension_numbers<[1], [0], [0], [1], [0, 0, 1, 1], [], []>} : vector<16x32xf32>, vector<32x128xf32>, vector<16x128xf32> -> vector<16x128xf32>
    %7 = arith.addf %3, %6 : vector<16x128xf32>
    %c0_6 = arith.constant 0 : index
    %c0_7 = arith.constant 0 : index
    %8 = vector.load %arg7[%c0_6, %c0_7] : memref<16x128xf32, #tpu.memory_space<vmem>>, vector<16x128xf32>
    tpu.vector_store %arg7[%c0_6, %c0_7], %7 {strides = array<i32>} : memref<16x128xf32, #tpu.memory_space<vmem>>, vector<16x128xf32>,
    %c0_i32_8 = arith.constant 0 : i32
    %9 = arith.cmpi eq, %arg2, %c0_i32_8 : i32
    %10 = arith.extui %9 : i1 to i32
    %c0_i32_9 = arith.constant 0 : i32
    %11 = arith.cmpi ne, %10, %c0_i32_9 : i32
    scf.if %11 {
      %c0_10 = arith.constant 0 : index
      %c0_11 = arith.constant 0 : index
      %12 = vector.load %arg7[%c0_10, %c0_11] : memref<16x128xf32, #tpu.memory_space<vmem>>, vector<16x128xf32>
      %c0_12 = arith.constant 0 : index
      %c0_13 = arith.constant 0 : index
      %13 = vector.load %arg5[%c0_12, %c0_13] : memref<1x128xf32, #tpu.memory_space<vmem>>, vector<1x128xf32>
      %14 = vector.broadcast %13 : vector<1x128xf32> to vector<16x128xf32>
      %15 = arith.addf %12, %14 : vector<16x128xf32>
      %cst_14 = arith.constant 0.000000e+00 : f32
      %16 = vector.broadcast %cst_14 : f32 to vector<16x128xf32>
      %17 = arith.maximumf %15, %16 : vector<16x128xf32>
      %c0_15 = arith.constant 0 : index
      %c0_16 = arith.constant 0 : index
      %18 = vector.load %arg6[%c0_15, %c0_16] : memref<16x128xf32, #tpu.memory_space<vmem>>, vector<16x128xf32>
      tpu.vector_store %arg6[%c0_15, %c0_16], %17 {strides = array<i32>} : memref<16x128xf32, #tpu.memory_space<vmem>>, vector<16x128xf32>,
    } else {
    }
    return
  }
  func.func @transform_0(%arg0: i32, %arg1: i32, %arg2: i32) -> (i32, i32) {
    %c0_i32 = arith.constant 0 : i32
    return %arg0, %arg2 : i32, i32
  }
  func.func @transform_1(%arg0: i32, %arg1: i32, %arg2: i32) -> (i32, i32) {
    %c0_i32 = arith.constant 0 : i32
    return %arg2, %arg1 : i32, i32
  }
  func.func @transform_2(%arg0: i32, %arg1: i32, %arg2: i32) -> (i32, i32) {
    %c0_i32 = arith.constant 0 : i32
    %c0_i32_0 = arith.constant 0 : i32
    return %c0_i32, %arg1 : i32, i32
  }
  func.func @transform_3(%arg0: i32, %arg1: i32, %arg2: i32) -> (i32, i32) {
    %c0_i32 = arith.constant 0 : i32
    return %arg0, %arg1 : i32, i32
  }
}

</mosaic_0001>

<bundles_post_ra>
// kernel: tpu_custom_call.1
= control target key start
LH: loop header
LB: loop body
LE: loop exit
PB: predicated region body
PF: predicated region fallthrough
CT: control target
= control target key end

     0   :  { %vm34_vm0 = vcmask 261120   ;;  %s497_s0 = inlined_call_operand.vmem [shape: f32[16,32], index: 0, kind: input, shape index: {}]   ;;  %s498_s1 = inlined_call_operand.vmem [shape: f32[32,128], index: 1, kind: input, shape index: {}]   ;;  %s499_s2 = inlined_call_operand.vmem [shape: f32[1,128], index: 2, kind: input, shape index: {}]   ;;  %s500_s3 = inlined_call_operand.vmem [shape: f32[128,16], index: 3, kind: input, shape index: {}]   ;;  %s501_s4 = inlined_call_operand.vmem [shape: f32[1,16], index: 4, kind: input, shape index: {}]   ;;  %s502_s5 = inlined_call_operand.hbm [shape: f32[16,16], index: 5, kind: output, shape index: {}]  }
   0x1   :  { %v23_v0 = vld [vmem:[%s498_s1] sm:$0xff]  ;;  %v24_v1 = vld [vmem:[%s498_s1 + $0x8] sm:$0xff]  ;;  %v25_v2 = vld [vmem:[%s498_s1 + $0x10] sm:$0xff] }
   0x2   :  { %v311_v3 = vpack.c.bf16 %v24_v1, %v23_v0  ;;  %v26_v4 = vld [vmem:[%s498_s1 + $0x18] sm:$0xff]  ;;  %v21_v5 = vld [vmem:[%s497_s0] sm:$0xff]  ;;  %v119_v8 = vld [vmem:[%s500_s3 + $0x8] sm:$0xff] }
   0x3   :  { %v315_v6 = vpack.c.bf16 %v26_v4, %v25_v2  ;;  %273 = vmatprep.mubr.msk.f32.mxu0 %vm34_vm0, %v21_v5  ;;  %v118_v7 = vld [vmem:[%s500_s3] sm:$0xff]  ;;  %v120_v9 = vld [vmem:[%s500_s3 + $0x10] sm:$0xff]  ;;  %v121_v11 = vld [vmem:[%s500_s3 + $0x18] sm:$0xff] }
   0x4   :  { %312 = vmatprep.subr.bf16.mxu0 %v311_v3  ;;  %v319_v10 = vpack.c.bf16 %v119_v8, %v118_v7  ;;  %v323_v12 = vpack.c.bf16 %v121_v11, %v120_v9  ;;  %v122_v13 = vld [vmem:[%s500_s3 + $0x20] sm:$0xff]  ;;  %v123_v14 = vld [vmem:[%s500_s3 + $0x28] sm:$0xff] }
   0x5   :  { %314 = vmatpush3.bf16.msra.mxu0 %v311_v3 }
   0x6   :  { %316 = vmatprep.subr.bf16.mxu0 %v315_v6  ;;  %320 = vmatprep.subr.bf16.mxu1 %v319_v10 }
   0x7   :  { %322 = vmatpush3.bf16.msra.mxu1 %v319_v10 }
   0x8   :  { %10 = vsyncpa [#allocation3], 0  ;;  %324 = vmatprep.subr.bf16.mxu1 %v323_v12  ;;  %v327_v15 = vpack.c.bf16 %v123_v14, %v122_v13  ;;  %v22_v16 = vld [vmem:[%s497_s0 + $0x8] sm:$0xff]  ;;  %v124_v17 = vld [vmem:[%s500_s3 + $0x30] sm:$0xff]  ;;  %vm218_vm1 = vcmask 130048  }
   0x9   :  { %318 = vmatpush3.bf16.msra.mxu0 %v315_v6  ;;  %v125_v18 = vld [vmem:[%s500_s3 + $0x38] sm:$0xff]  ;;  %v126_v20 = vld [vmem:[%s500_s3 + $0x40] sm:$0xff]  ;;  %v127_v21 = vld [vmem:[%s500_s3 + $0x48] sm:$0xff] }
   0xa   :  { %v331_v19 = vpack.c.bf16 %v125_v18, %v124_v17  ;;  %v335_v22 = vpack.c.bf16 %v127_v21, %v126_v20  ;;  %v128_v23 = vld [vmem:[%s500_s3 + $0x50] sm:$0xff]  ;;  %v129_v24 = vld [vmem:[%s500_s3 + $0x58] sm:$0xff]  ;;  %v130_v26 = vld [vmem:[%s500_s3 + $0x60] sm:$0xff] }
   0xb   :  { %326 = vmatpush3.bf16.msra.mxu1 %v323_v12  ;;  %v339_v25 = vpack.c.bf16 %v129_v24, %v128_v23  ;;  %v131_v27 = vld [vmem:[%s500_s3 + $0x68] sm:$0xff]  ;;  %v132_v29 = vld [vmem:[%s500_s3 + $0x70] sm:$0xff]  ;;  %v133_v30 = vld [vmem:[%s500_s3 + $0x78] sm:$0xff]  ;;  %s378_s3 = smov [#allocation2]  }
   0xc   :  { %274 = vmatmul.mubr.msk.f32.vlgmr.msra.gmra.mrb[0].mxu0 %vm34_vm0, %v22_v16  ;;  %328 = vmatprep.subr.bf16.mxu1 %v327_v15  ;;  %v343_v28 = vpack.c.bf16 %v131_v27, %v130_v26  ;;  %v347_v31 = vpack.c.bf16 %v133_v30, %v132_v29  ;;  %v237_v32 = vld [vmem:[%s499_s2] ss:$0 sm:$0xff]  ;;  %s226_s13 = sshll.u32 %s378_s3, 4  ;;  %s227_s13 = int_to_ptr.vmem [resolvable:$true] %s226_s13 }
   0xd   :  { %v240_v39 = vld [vmem:[%s501_s4] ss:$0 sm:$0xff]  ;;  %s354_s2 = scalar_lea.vmem %s227_s13, 256  ;;  %p359_p1 = scmp.lt.s32.totalorder %s227_s13, %s227_s13 }
   0xe   :  { %p355_p0 = scmp.ne.s32.totalorder %s227_s13, %s354_s2  ;;  %p360_p2 = scmp.lt.s32.totalorder %s354_s2, %s354_s2 }
   0xf   :  { %330 = vmatpush3.bf16.msra.mxu1 %v327_v15 }
  0x10   :  { %332 = vmatprep.subr.bf16.mxu1 %v331_v19  ;;  %p361_p3 = por %p360_p2, %p359_p1 }
  0x12   :  { %p362_p4 = pnand %p361_p3, %p355_p0 }
  0x13   :  { %334 = vmatpush3.bf16.msra.mxu1 %v331_v19 }
  0x14   :  { %336 = vmatprep.subr.bf16.mxu1 %v335_v22 }
  0x17   :  { %338 = vmatpush3.bf16.msra.mxu1 %v335_v22 }
  0x18   :  { %340 = vmatprep.subr.bf16.mxu1 %v339_v25 }
  0x1b   :  { %342 = vmatpush3.bf16.msra.mxu1 %v339_v25 }
  0x1c   :  { %344 = vmatprep.subr.bf16.mxu1 %v343_v28 }
  0x1f   :  { %346 = vmatpush3.bf16.msra.mxu1 %v343_v28 }
  0x20   :  { %348 = vmatprep.subr.bf16.mxu1 %v347_v31 }
  0x23   :  { %350 = vmatpush3.bf16.msra.mxu1 %v347_v31 }
  0xdf   :  { %v275_v33 = vpop.f32.mrb[0].mxu0 }
  0xe0   :  { %v113_v34 = vadd.f32 %v275_v33, %v237_v32  ;;  %v107_v35 = vpop.f32.mrb[1].mxu0 }
  0xe1   :  { %v108_v36 = vadd.f32 %v237_v32, %v107_v35 }
  0xe2   :  { %v117_v38 = vmax.f32 %v113_v34, 0.0 }
  0xe3   :  { %v116_v37 = vmax.f32 %v108_v36, 0.0 }
  0xe5   :  { %308 = vmatprep.mubr.f32.mxu1 %v116_v37 }
  0xe6   :  { %309 = vmatmul.mubr.f32.vlgmr.msra.gmra.mrb[0].mxu1 %v117_v38 }
 0x1b9   :  { %v310_v40 = vpop.f32.mrb[0].mxu1 }
 0x1ba   :  { %v213_v41 = vadd.f32 %v310_v40, %v240_v39  ;;  %v207_v42 = vpop.f32.mrb[1].mxu1 }
 0x1bb   :  { %v208_v43 = vadd.f32 %v240_v39, %v207_v42 }
 0x1bc   :  { %v217_v44 = vmax.f32 %v213_v41, 0.0 }
 0x1bd   :  { %v216_v45 = vmax.f32 %v208_v43, 0.0 }
 0x1be   :  { %220 = vst.msk [vmem:[#allocation2 + $0x8] sm:$0xff] %vm218_vm1, %v217_v44 }
 0x1bf   :  { %219 = vst.msk [vmem:[#allocation2] sm:$0xff] %vm218_vm1, %v216_v45 }
 0x1c0   :  { %365 = shalt.err (!%p362_p4)
}
 0x1c1   :  { %s366_s15 = scalar_lea.hbm %s502_s5, 256 }
 0x1c2   :  { %p367_p5 = scmp.ne.s32.totalorder %s502_s5, %s366_s15  ;;  %p370_p6 = scmp.lt.u32.totalorder %s366_s15, %s502_s5 }
 0x1c4   :  { %p372_p7 = pnand %p370_p6, %p367_p5 }
 0x1c6   :  { %375 = shalt.err (!%p372_p7)
}
 0x1c7   :  { %s379_s20 = smov 128   ;;  %s380_s21 = smov 8  }
 0x1c8   :  { %232 = dma.vmem_to_hbm [thread:$0]  %s227_s13, 256, %s502_s5, [#allocation3], %s379_s20, %s379_s20, %s380_s21  }
 0x1c9   :  { %376 = dma.done.wait [#allocation3], 256  }
 0x1ca   :  { %377 = vsyncadd [#allocation3], 4294967040 }
 0x1cb   :  { %236 = vsyncpa [#allocation3], 1 }

// kernel: tpu_custom_call.1
= control target key start
LH: loop header
LB: loop body
LE: loop exit
PB: predicated region body
PF: predicated region fallthrough
CT: control target
= control target key end

     0   :  { %vm34_vm0 = vcmask 261120   ;;  %s497_s0 = inlined_call_operand.vmem [shape: f32[16,32], index: 0, kind: input, shape index: {}]   ;;  %s498_s1 = inlined_call_operand.vmem [shape: f32[32,128], index: 1, kind: input, shape index: {}]   ;;  %s499_s2 = inlined_call_operand.vmem [shape: f32[1,128], index: 2, kind: input, shape index: {}]   ;;  %s500_s3 = inlined_call_operand.vmem [shape: f32[128,16], index: 3, kind: input, shape index: {}]   ;;  %s501_s4 = inlined_call_operand.vmem [shape: f32[1,16], index: 4, kind: input, shape index: {}]   ;;  %s502_s5 = inlined_call_operand.hbm [shape: f32[16,16], index: 5, kind: output, shape index: {}]  }
   0x1   :  { %v23_v0 = vld [vmem:[%s498_s1] sm:$0xff]  ;;  %v24_v1 = vld [vmem:[%s498_s1 + $0x8] sm:$0xff]  ;;  %v25_v2 = vld [vmem:[%s498_s1 + $0x10] sm:$0xff] }
   0x2   :  { %v311_v3 = vpack.c.bf16 %v24_v1, %v23_v0  ;;  %v26_v4 = vld [vmem:[%s498_s1 + $0x18] sm:$0xff]  ;;  %v21_v5 = vld [vmem:[%s497_s0] sm:$0xff]  ;;  %v119_v8 = vld [vmem:[%s500_s3 + $0x8] sm:$0xff] }
   0x3   :  { %v315_v6 = vpack.c.bf16 %v26_v4, %v25_v2  ;;  %273 = vmatprep.mubr.msk.f32.mxu0 %vm34_vm0, %v21_v5  ;;  %v118_v7 = vld [vmem:[%s500_s3] sm:$0xff]  ;;  %v120_v9 = vld [vmem:[%s500_s3 + $0x10] sm:$0xff]  ;;  %v121_v11 = vld [vmem:[%s500_s3 + $0x18] sm:$0xff] }
   0x4   :  { %312 = vmatprep.subr.bf16.mxu0 %v311_v3  ;;  %v319_v10 = vpack.c.bf16 %v119_v8, %v118_v7  ;;  %v323_v12 = vpack.c.bf16 %v121_v11, %v120_v9  ;;  %v122_v13 = vld [vmem:[%s500_s3 + $0x20] sm:$0xff]  ;;  %v123_v14 = vld [vmem:[%s500_s3 + $0x28] sm:$0xff] }
   0x5   :  { %314 = vmatpush3.bf16.msra.mxu0 %v311_v3 }
   0x6   :  { %316 = vmatprep.subr.bf16.mxu0 %v315_v6  ;;  %320 = vmatprep.subr.bf16.mxu1 %v319_v10 }
   0x7   :  { %322 = vmatpush3.bf16.msra.mxu1 %v319_v10 }
   0x8   :  { %10 = vsyncpa [#allocation3], 0  ;;  %324 = vmatprep.subr.bf16.mxu1 %v323_v12  ;;  %v327_v15 = vpack.c.bf16 %v123_v14, %v122_v13  ;;  %v22_v16 = vld [vmem:[%s497_s0 + $0x8] sm:$0xff]  ;;  %v124_v17 = vld [vmem:[%s500_s3 + $0x30] sm:$0xff]  ;;  %vm218_vm1 = vcmask 130048  }
   0x9   :  { %318 = vmatpush3.bf16.msra.mxu0 %v315_v6  ;;  %v125_v18 = vld [vmem:[%s500_s3 + $0x38] sm:$0xff]  ;;  %v126_v20 = vld [vmem:[%s500_s3 + $0x40] sm:$0xff]  ;;  %v127_v21 = vld [vmem:[%s500_s3 + $0x48] sm:$0xff] }
   0xa   :  { %v331_v19 = vpack.c.bf16 %v125_v18, %v124_v17  ;;  %v335_v22 = vpack.c.bf16 %v127_v21, %v126_v20  ;;  %v128_v23 = vld [vmem:[%s500_s3 + $0x50] sm:$0xff]  ;;  %v129_v24 = vld [vmem:[%s500_s3 + $0x58] sm:$0xff]  ;;  %v130_v26 = vld [vmem:[%s500_s3 + $0x60] sm:$0xff] }
   0xb   :  { %326 = vmatpush3.bf16.msra.mxu1 %v323_v12  ;;  %v339_v25 = vpack.c.bf16 %v129_v24, %v128_v23  ;;  %v131_v27 = vld [vmem:[%s500_s3 + $0x68] sm:$0xff]  ;;  %v132_v29 = vld [vmem:[%s500_s3 + $0x70] sm:$0xff]  ;;  %v133_v30 = vld [vmem:[%s500_s3 + $0x78] sm:$0xff]  ;;  %s378_s3 = smov [#allocation2]  }
   0xc   :  { %274 = vmatmul.mubr.msk.f32.vlgmr.msra.gmra.mrb[0].mxu0 %vm34_vm0, %v22_v16  ;;  %328 = vmatprep.subr.bf16.mxu1 %v327_v15  ;;  %v343_v28 = vpack.c.bf16 %v131_v27, %v130_v26  ;;  %v347_v31 = vpack.c.bf16 %v133_v30, %v132_v29  ;;  %v237_v32 = vld [vmem:[%s499_s2] ss:$0 sm:$0xff]  ;;  %s226_s13 = sshll.u32 %s378_s3, 4  ;;  %s227_s13 = int_to_ptr.vmem [resolvable:$true] %s226_s13 }
   0xd   :  { %v240_v39 = vld [vmem:[%s501_s4] ss:$0 sm:$0xff]  ;;  %s354_s2 = scalar_lea.vmem %s227_s13, 256  ;;  %p359_p1 = scmp.lt.s32.totalorder %s227_s13, %s227_s13 }
   0xe   :  { %p355_p0 = scmp.ne.s32.totalorder %s227_s13, %s354_s2  ;;  %p360_p2 = scmp.lt.s32.totalorder %s354_s2, %s354_s2 }
   0xf   :  { %330 = vmatpush3.bf16.msra.mxu1 %v327_v15 }
  0x10   :  { %332 = vmatprep.subr.bf16.mxu1 %v331_v19  ;;  %p361_p3 = por %p360_p2, %p359_p1 }
  0x12   :  { %p362_p4 = pnand %p361_p3, %p355_p0 }
  0x13   :  { %334 = vmatpush3.bf16.msra.mxu1 %v331_v19 }
  0x14   :  { %336 = vmatprep.subr.bf16.mxu1 %v335_v22 }
  0x17   :  { %338 = vmatpush3.bf16.msra.mxu1 %v335_v22 }
  0x18   :  { %340 = vmatprep.subr.bf16.mxu1 %v339_v25 }
  0x1b   :  { %342 = vmatpush3.bf16.msra.mxu1 %v339_v25 }
  0x1c   :  { %344 = vmatprep.subr.bf16.mxu1 %v343_v28 }
  0x1f   :  { %346 = vmatpush3.bf16.msra.mxu1 %v343_v28 }
  0x20   :  { %348 = vmatprep.subr.bf16.mxu1 %v347_v31 }
  0x23   :  { %350 = vmatpush3.bf16.msra.mxu1 %v347_v31 }
  0xdf   :  { %v275_v33 = vpop.f32.mrb[0].mxu0 }
  0xe0   :  { %v113_v34 = vadd.f32 %v275_v33, %v237_v32  ;;  %v107_v35 = vpop.f32.mrb[1].mxu0 }
  0xe1   :  { %v108_v36 = vadd.f32 %v237_v32, %v107_v35 }
  0xe2   :  { %v117_v38 = vmax.f32 %v113_v34, 0.0 }
  0xe3   :  { %v116_v37 = vmax.f32 %v108_v36, 0.0 }
  0xe5   :  { %308 = vmatprep.mubr.f32.mxu1 %v116_v37 }
  0xe6   :  { %309 = vmatmul.mubr.f32.vlgmr.msra.gmra.mrb[0].mxu1 %v117_v38 }
 0x1b9   :  { %v310_v40 = vpop.f32.mrb[0].mxu1 }
 0x1ba   :  { %v213_v41 = vadd.f32 %v310_v40, %v240_v39  ;;  %v207_v42 = vpop.f32.mrb[1].mxu1 }
 0x1bb   :  { %v208_v43 = vadd.f32 %v240_v39, %v207_v42 }
 0x1bc   :  { %v217_v44 = vmax.f32 %v213_v41, 0.0 }
 0x1bd   :  { %v216_v45 = vmax.f32 %v208_v43, 0.0 }
 0x1be   :  { %220 = vst.msk [vmem:[#allocation2 + $0x8] sm:$0xff] %vm218_vm1, %v217_v44 }
 0x1bf   :  { %219 = vst.msk [vmem:[#allocation2] sm:$0xff] %vm218_vm1, %v216_v45 }
 0x1c0   :  { %365 = shalt.err (!%p362_p4)
}
 0x1c1   :  { %s366_s15 = scalar_lea.hbm %s502_s5, 256 }
 0x1c2   :  { %p367_p5 = scmp.ne.s32.totalorder %s502_s5, %s366_s15  ;;  %p370_p6 = scmp.lt.u32.totalorder %s366_s15, %s502_s5 }
 0x1c4   :  { %p372_p7 = pnand %p370_p6, %p367_p5 }
 0x1c6   :  { %375 = shalt.err (!%p372_p7)
}
 0x1c7   :  { %s379_s20 = smov 128   ;;  %s380_s21 = smov 8  }
 0x1c8   :  { %232 = dma.vmem_to_hbm [thread:$0]  %s227_s13, 256, %s502_s5, [#allocation3], %s379_s20, %s379_s20, %s380_s21  }
 0x1c9   :  { %376 = dma.done.wait [#allocation3], 256  }
 0x1ca   :  { %377 = vsyncadd [#allocation3], 4294967040 }
 0x1cb   :  { %236 = vsyncpa [#allocation3], 1 }

// kernel: tpu_custom_call.1
= control target key start
LH: loop header
LB: loop body
LE: loop exit
PB: predicated region body
PF: predicated region fallthrough
CT: control target
= control target key end

     0   :  { %8 = vsyncpa [#allocation4], 0  ;;  %s357_s0 = inlined_call_operand.hbm [shape: f32[16,32], index: 0, kind: input, shape index: {}]   ;;  %s358_s1 = inlined_call_operand.hbm [shape: f32[32,128], index: 1, kind: input, shape index: {}]   ;;  %s359_s2 = inlined_call_operand.vmem [shape: f32[1,128], index: 2, kind: input, shape index: {}]   ;;  %s360_s3 = inlined_call_operand.hbm [shape: f32[16,128], index: 3, kind: output, shape index: {}]  }
   0x1   :  { %9 = vsyncpa [#allocation7], 0 }
   0x2   :  { %10 = vsyncpa [#allocation5], 0  ;;  %s284_s12 = smov [#allocation3]   ;;  %s212_s16 = scalar_lea.hbm %s357_s0, 256 }
   0x3   :  { %s16_s13 = sshll.u32 %s284_s12, 4  ;;  %p213_p0 = scmp.ne.s32.totalorder %s357_s0, %s212_s16  ;;  %s17_s13 = int_to_ptr.vmem [resolvable:$true] %s16_s13 }
   0x4   :  { %p216_p1 = scmp.lt.u32.totalorder %s212_s16, %s357_s0 }
   0x6   :  { %p218_p2 = pnand %p216_p1, %p213_p0 }
   0x8   :  { %221 = shalt.err (!%p218_p2)
}
   0x9   :  { %s222_s21 = scalar_lea.vmem %s17_s13, 256  ;;  %p227_p4 = scmp.lt.s32.totalorder %s17_s13, %s17_s13 }
   0xa   :  { %p223_p3 = scmp.ne.s32.totalorder %s17_s13, %s222_s21  ;;  %p228_p5 = scmp.lt.s32.totalorder %s222_s21, %s222_s21 }
   0xc   :  { %p229_p6 = por %p228_p5, %p227_p4 }
   0xe   :  { %p230_p7 = pnand %p229_p6, %p223_p3 }
  0x10   :  { %233 = shalt.err (!%p230_p7)
}
  0x11   :  { %s285_s22 = smov 128   ;;  %s286_s23 = smov 8  }
  0x12   :  { %22 = dma.hbm_to_vmem [thread:$0]  %s357_s0, 256, %s17_s13, [#allocation4], %s285_s22, %s285_s22, %s286_s23  }
  0x13   :  { %s287_s26 = smov [#allocation6]   ;;  %s234_s30 = scalar_lea.hbm %s358_s1, 512 }
  0x14   :  { %s28_s27 = sshll.u32 %s287_s26, 4  ;;  %p235_p8 = scmp.ne.s32.totalorder %s358_s1, %s234_s30  ;;  %s29_s27 = int_to_ptr.vmem [resolvable:$true] %s28_s27 }
  0x15   :  { %p238_p9 = scmp.lt.u32.totalorder %s234_s30, %s358_s1 }
  0x17   :  { %p240_p10 = pnand %p238_p9, %p235_p8 }
  0x19   :  { %243 = shalt.err (!%p240_p10)
}
  0x1a   :  { %s244_s8 = scalar_lea.vmem %s29_s27, 512  ;;  %p249_p12 = scmp.lt.s32.totalorder %s29_s27, %s29_s27 }
  0x1b   :  { %p245_p11 = scmp.ne.s32.totalorder %s29_s27, %s244_s8  ;;  %p250_p13 = scmp.lt.s32.totalorder %s244_s8, %s244_s8 }
  0x1d   :  { %p251_p0 = por %p250_p13, %p249_p12 }
  0x1f   :  { %p252_p1 = pnand %p251_p0, %p245_p11 }
  0x21   :  { %255 = shalt.err (!%p252_p1)
}
  0x22   :  { %34 = dma.hbm_to_vmem [thread:$0]  %s358_s1, 512, %s29_s27, [#allocation7], %s285_s22, %s285_s22, %s286_s23  }
  0x23   :  { %278 = dma.done.wait [#allocation4], 256  }
  0x24   :  { %279 = vsyncadd [#allocation4], 4294967040 }
  0x25   :  { %280 = dma.done.wait [#allocation7], 512  }
  0x26   :  { %281 = vsyncadd [#allocation7], 4294966784  ;;  %vm57_vm0 = vcmask 261120   ;;  %v53_v0 = vld [vmem:[#allocation6] sm:$0xff]  ;;  %v54_v1 = vld [vmem:[#allocation6 + $0x8] sm:$0xff]  ;;  %s288_s11 = smov [#allocation8]  }
  0x27   :  { %v55_v2 = vld [vmem:[#allocation6 + $0x10] sm:$0xff]  ;;  %v199_v3 = vpack.c.bf16 %v54_v1, %v53_v0  ;;  %v56_v4 = vld [vmem:[#allocation6 + $0x18] sm:$0xff]  ;;  %s166_s12 = sshll.u32 %s288_s11, 4  ;;  %s167_s12 = int_to_ptr.vmem [resolvable:$true] %s166_s12 }
  0x28   :  { %v51_v5 = vld [vmem:[#allocation3] sm:$0xff]  ;;  %v203_v6 = vpack.c.bf16 %v56_v4, %v55_v2  ;;  %v52_v7 = vld [vmem:[#allocation3 + $0x8] sm:$0xff]  ;;  %s256_s13 = scalar_lea.vmem %s167_s12, 256  ;;  %p261_p3 = scmp.lt.s32.totalorder %s167_s12, %s167_s12 }
  0x29   :  { %196 = vmatprep.mubr.msk.f32.mxu0 %vm57_vm0, %v51_v5  ;;  %200 = vmatprep.subr.bf16.mxu0 %v199_v3  ;;  %v181_v8 = vld [vmem:[%s359_s2] ss:$0 sm:$0xff]  ;;  %p257_p2 = scmp.ne.s32.totalorder %s167_s12, %s256_s13  ;;  %p262_p4 = scmp.lt.s32.totalorder %s256_s13, %s256_s13 }
  0x2a   :  { %202 = vmatpush3.bf16.msra.mxu0 %v199_v3 }
  0x2b   :  { %204 = vmatprep.subr.bf16.mxu0 %v203_v6  ;;  %p263_p5 = por %p262_p4, %p261_p3 }
  0x2d   :  { %p264_p6 = pnand %p263_p5, %p257_p2 }
  0x2e   :  { %206 = vmatpush3.bf16.msra.mxu0 %v203_v6 }
  0x31   :  { %197 = vmatmul.mubr.msk.f32.vlgmr.msra.gmra.mrb[0].mxu0 %vm57_vm0, %v52_v7 }
 0x104   :  { %v198_v9 = vpop.f32.mrb[0].mxu0 }
 0x105   :  { %v156_v10 = vadd.f32 %v198_v9, %v181_v8  ;;  %v130_v11 = vpop.f32.mrb[1].mxu0 }
 0x106   :  { %v155_v12 = vadd.f32 %v181_v8, %v130_v11 }
 0x107   :  { %v158_v13 = vmax.f32 %v156_v10, 0.0 }
 0x108   :  { %v157_v14 = vmax.f32 %v155_v12, 0.0 }
 0x109   :  { %160 = vst [vmem:[#allocation8 + $0x8] sm:$0xff] %v158_v13 }
 0x10a   :  { %159 = vst [vmem:[#allocation8] sm:$0xff] %v157_v14 }
 0x10b   :  { %267 = shalt.err (!%p264_p6)
}
 0x10c   :  { %s268_s15 = scalar_lea.hbm %s360_s3, 256 }
 0x10d   :  { %p269_p7 = scmp.ne.s32.totalorder %s360_s3, %s268_s15  ;;  %p272_p8 = scmp.lt.u32.totalorder %s268_s15, %s360_s3 }
 0x10f   :  { %p274_p9 = pnand %p272_p8, %p269_p7 }
 0x111   :  { %277 = shalt.err (!%p274_p9)
}
 0x112   :  { %172 = dma.vmem_to_hbm [thread:$0]  %s167_s12, 256, %s360_s3, [#allocation5], %s285_s22, %s285_s22, %s286_s23  }
 0x113   :  { %282 = dma.done.wait [#allocation5], 256  }
 0x114   :  { %283 = vsyncadd [#allocation5], 4294967040 }
 0x115   :  { %176 = vsyncpa [#allocation4], 1 }
 0x116   :  { %177 = vsyncpa [#allocation7], 1 }
 0x117   :  { %178 = vsyncpa [#allocation5], 1 }

</bundles_post_ra>
